<compile_context>
chip_gen: v7x
topology: tpu7x:2x2x1
jax: 0.10.0
libtpu: 0.0.40
codegen_flags: <defaults>
</compile_context>

<pallas_src>
import functools

import jax
import jax.numpy as jnp
from jax.experimental import pallas as pl
from jax.experimental.pallas import tpu as pltpu

LANES = 128  # lane width of the packed parameter slab / output slabs


# ----------------------------- fused Pallas kernel -----------------------------

def _fused_forward_kernel(*refs, layout, dims, scale, compute_cls, compute_gen,
                          tok_pad):
  B, Ls, Ln, Lt, H, V = dims
  f32 = jnp.float32

  emb_ref, p_ref, adj_ref = refs[0], refs[1], refs[2]
  out_refs = refs[3:]
  oi = 0
  if compute_cls:
    cls_out_ref = out_refs[oi]
    oi += 1
  tok_out_ref = out_refs[oi]

  def P(name):
    r0, nr, nc = layout[name]           # static python ints -> zero-cost view
    return p_ref[r0:r0 + nr, 0:nc]

  def mm(a, b):
    return jnp.dot(a, b, preferred_element_type=f32)

  emb = emb_ref[...]
  src = emb[0:B * Ls]                            # (B*Ls, H)
  node = emb[B * Ls:B * (Ls + Ln)]               # (B*Ln, H)
  tgt = emb[B * (Ls + Ln):B * (Ls + Ln + Lt)]    # (B*Lt, H)

  # ---- seq encoder: seq_output (B*Ls, H), hidden (B, H) ----
  seq_out = jnp.tanh(mm(src, P('seq_w')) + P('seq_b'))
  seq3 = seq_out.reshape(B, Ls, H)
  hidden = jnp.tanh(
      mm(jnp.sum(seq3, axis=1) * (1.0 / Ls), P('seq_hw')) + P('seq_hb'))

  # ---- node encoder ----  (hidden_node / encoder_transformer graph_hidden
  # are overwritten before use in the reference forward -> dead compute dropped)
  node_out = jnp.tanh(mm(node, P('node_w')) + P('node_b'))       # (B*Ln, H)

  # ---- encoder transformer ----
  node_in = jnp.tanh(mm(node_out, P('enct_w')) + P('enct_b'))    # (B*Ln, H)
  node_in3 = node_in.reshape(B, Ln, H)

  # ---- graph encoder: per-batch adjacency aggregation (batched dot) ----
  agg = jnp.einsum('bij,bjh->bih', adj_ref[...], node_in3,
                   preferred_element_type=f32)                   # (B, Ln, H)
  gnode = jnp.tanh(mm(agg.reshape(B * Ln, H), P('graph_w')) + P('graph_b')
                   + node_in)                                    # (B*Ln, H)
  gnode3 = gnode.reshape(B, Ln, H)

  # ---- classifier + decoder-transformer enc projection share seq_out LHS:
  #      one (H, 128) weight slab [dect_w | cls_w], one full-vreg cls store ----
  seq_head = mm(seq_out, P('seqhead_w')) + P('seqhead_b')        # (B*Ls, 128)
  enc_out = jnp.tanh(seq_head[:, 0:H])                           # (B*Ls, H)
  if compute_cls:
    cls_out_ref[...] = seq_head       # wrapper slices lanes [H : H+n_class]
  enc3 = enc_out.reshape(B, Ls, H)

  # ---- decoder transformer hidden transforms ----
  hidden_d = jnp.tanh(mm(hidden, P('dect_hw')) + P('dect_hb'))   # (B, H)
  graph_hidden = jnp.tanh(
      mm(jnp.sum(gnode3, axis=1) * (1.0 / Ln), P('dect_gw')) + P('dect_gb'))

  # ---- decoder: q projection + per-batch init-state injection ----
  q = jnp.tanh(mm(tgt, P('dec_qw')) + P('dec_qb'))               # (B*Lt, H)
  q3 = q.reshape(B, Lt, H) + (hidden_d + graph_hidden)[:, None, :]
  qs = q3 * scale                   # fold 1/sqrt(H) into q once, not the scores

  # TODO(synk): 'lengths' padding masks and decoder causal masking are not modeled.
  def attn(mem3):
    s = jnp.einsum('bqh,bkh->bqk', qs, mem3, preferred_element_type=f32)
    mx = jnp.max(s, axis=-1, keepdims=True)
    p = jnp.exp(s - mx)
    inv = pl.reciprocal(jnp.sum(p, axis=-1, keepdims=True), approx=False)
    return jnp.einsum('bqk,bkh->bqh', p * inv, mem3,
                      preferred_element_type=f32)

  ctx_seq = attn(enc3).reshape(B * Lt, H)
  ctx_graph = attn(gnode3).reshape(B * Lt, H)
  q_flat = q3.reshape(B * Lt, H)

  # ---- output projection: ONE (3H, H) matmul on [q | ctx_seq | ctx_graph] ----
  cat = jnp.concatenate([q_flat, ctx_seq, ctx_graph], axis=-1)   # (B*Lt, 3H)
  pred_h = jnp.tanh(mm(cat, P('dec_o')) + P('dec_ob'))           # (B*Lt, H)

  # ---- generator + packed lane-dense per-token output slab ----
  if compute_gen:
    gen = mm(pred_h, P('gen_w')) + P('gen_b')                    # (B*Lt, V)
  else:
    gen = jnp.zeros((B * Lt, V), f32)
  pieces = [gen, ctx_seq, pred_h]
  if tok_pad:
    pieces.append(jnp.zeros((B * Lt, tok_pad), f32))
  tok_out_ref[...] = jnp.concatenate(pieces, axis=-1)            # one 128-lane store


# ----------------------------- parameters ---------------------------------

def init_params(key, H=32, V=64, n_class=2):
  ks = jax.random.split(key, 16)

  def w(k, shape):
    return jax.random.normal(k, shape, jnp.float32) * 0.1

  z = lambda d: jnp.zeros((1, d), jnp.float32)
  return {
      "emb_src":  w(ks[0], (V, H)),
      "emb_node": w(ks[1], (V, H)),
      "emb_tgt":  w(ks[2], (V, H)),
      # seq encoder
      "seq_w": w(ks[3], (H, H)),  "seq_b": z(H),
      "seq_hw": w(ks[4], (H, H)), "seq_hb": z(H),
      # node encoder
      "node_w": w(ks[5], (H, H)), "node_b": z(H),
      # encoder transformer
      "enct_w": w(ks[6], (H, H)), "enct_b": z(H),
      # graph encoder
      "graph_w": w(ks[7], (H, H)), "graph_b": z(H),
      # classifier
      "cls_w": w(ks[8], (H, n_class)), "cls_b": z(n_class),
      # decoder transformer
      "dect_w": w(ks[9], (H, H)),   "dect_b": z(H),
      "dect_hw": w(ks[10], (H, H)), "dect_hb": z(H),
      "dect_gw": w(ks[11], (H, H)), "dect_gb": z(H),
      # decoder
      "dec_q": w(ks[12], (H, H)),     "dec_qb": z(H),
      "dec_o": w(ks[13], (3 * H, H)), "dec_ob": z(H),
      # generator
      "gen_w": w(ks[14], (H, V)), "gen_b": z(V),
  }


def pack_params(params):
  """One-time packing of every weight / bias into a single (rows, 128) slab.

  Each entry starts at an 8-sublane-aligned row; the kernel reads it back with
  a zero-cost static slice.  Done at init time so padded slabs live in HBM
  once (not re-materialized per forward call).
  """
  H = params["seq_w"].shape[0]
  n_class = params["cls_w"].shape[1]

  # seq_out shared-LHS head: [dect_w | cls_w] (+ biases) in one (H, 128) slab.
  seqhead_w = jnp.zeros((H, LANES), jnp.float32)
  seqhead_w = seqhead_w.at[:, :H].set(params["dect_w"])
  seqhead_w = seqhead_w.at[:, H:H + n_class].set(params["cls_w"])
  seqhead_b = jnp.zeros((1, LANES), jnp.float32)
  seqhead_b = seqhead_b.at[:, :H].set(params["dect_b"])
  seqhead_b = seqhead_b.at[:, H:H + n_class].set(params["cls_b"])

  entries = [
      ("seq_w", params["seq_w"]), ("seq_hw", params["seq_hw"]),
      ("node_w", params["node_w"]), ("enct_w", params["enct_w"]),
      ("graph_w", params["graph_w"]),
      ("dect_hw", params["dect_hw"]), ("dect_gw", params["dect_gw"]),
      ("dec_qw", params["dec_q"]), ("dec_o", params["dec_o"]),
      ("seqhead_w", seqhead_w), ("gen_w", params["gen_w"]),
      ("seq_b", params["seq_b"]), ("seq_hb", params["seq_hb"]),
      ("node_b", params["node_b"]), ("enct_b", params["enct_b"]),
      ("graph_b", params["graph_b"]),
      ("dect_hb", params["dect_hb"]), ("dect_gb", params["dect_gb"]),
      ("dec_qb", params["dec_qb"]), ("dec_ob", params["dec_ob"]),
      ("gen_b", params["gen_b"]), ("seqhead_b", seqhead_b),
  ]
  layout = []
  row = 0
  for name, arr in entries:
    nr, nc = arr.shape
    layout.append((name, row, nr, nc))
    row += -(-nr // 8) * 8                 # keep every entry 8-row aligned
  total = -(-row // 8) * 8
  slab = jnp.zeros((total, LANES), jnp.float32)
  for (name, r0, nr, nc), (_, arr) in zip(layout, entries):
    slab = slab.at[r0:r0 + nr, :nc].set(arr.astype(jnp.float32))
  return slab, tuple(layout)


# ----------------------------- forward pass --------------------------------

@functools.partial(jax.jit, static_argnames=("layout", "n_class", "model_type"))
def unified_forward(packed, emb, inputs, *, layout, n_class, model_type="unified"):
  ldict = {name: (r0, nr, nc) for name, r0, nr, nc in layout}
  H = emb["emb_src"].shape[1]
  V = ldict["gen_w"][2]

  src = inputs["seq-encoder"]["src_seq"]
  node_ids = inputs["node-encoder"]["src_seq"]
  tgt = inputs["decoder"]["tgt_seq"]
  adj = inputs["graph-encoder"]["edges"].astype(jnp.float32)

  B, Ls = src.shape
  Ln = node_ids.shape[1]
  Lt = tgt.shape[1]

  # ---- plain-JAX glue: embedding gathers, concatenated into one input slab.
  # (in-kernel row slices are static; keep B*Ls / B*Ln multiples of 8 so they
  #  stay sublane-aligned — true at these shapes.)
  emb_all = jnp.concatenate([
      emb["emb_src"][src].reshape(B * Ls, H),
      emb["emb_node"][node_ids].reshape(B * Ln, H),
      emb["emb_tgt"][tgt].reshape(B * Lt, H)], axis=0)

  # TODO(synk): seq_index / node_index re-alignment gather (aligner) is not modeled.

  compute_cls = model_type != "generate"
  compute_gen = model_type != "classify"
  tok_w = V + 2 * H                              # [gen | attn | pred_h]
  tok_pad = (-tok_w) % LANES

  out_shape = []
  if compute_cls:
    out_shape.append(jax.ShapeDtypeStruct((B * Ls, LANES), jnp.float32))
  out_shape.append(jax.ShapeDtypeStruct((B * Lt, tok_w + tok_pad), jnp.float32))

  vmem = pl.BlockSpec(memory_space=pltpu.MemorySpace.VMEM)
  res = pl.pallas_call(
      functools.partial(
          _fused_forward_kernel, layout=ldict, dims=(B, Ls, Ln, Lt, H, V),
          scale=1.0 / float(H) ** 0.5, compute_cls=compute_cls,
          compute_gen=compute_gen, tok_pad=tok_pad),
      out_shape=tuple(out_shape),
      in_specs=[vmem, vmem, vmem],
      out_specs=tuple([vmem] * len(out_shape)),
      # NOTE on scaling: at larger B/L/H add an M-tiled row grid with
      # dimension_semantics=("parallel",) (2 TCs on v7x) and set
      # vmem_limit_bytes; the batched-dot formulation already avoids the
      # O(B^2 L^2) VMEM blowup.  Not needed at these toy sizes.
  )(emb_all, packed, adj)

  oi = 0
  outputs = {}
  if compute_cls:
    cls_slab = res[oi]
    oi += 1
    outputs["classification"] = (
        cls_slab[:, H:H + n_class].reshape(B, Ls, n_class))
  tok = res[oi]
  gen_dict = {"attn": tok[:, V:V + H].reshape(B, Lt, H),
              "pred": tok[:, V + H:V + 2 * H].reshape(B, Lt, H)}
  if compute_gen:
    gen_dict["pred"] = tok[:, :V].reshape(B, Lt, V)
  outputs["generation"] = gen_dict
  return outputs


# ----------------------------- driver ---------------------------------------

if __name__ == "__main__":
  B, Ls, Ln, Lt, H, V = 2, 8, 8, 8, 32, 64
  key = jax.random.PRNGKey(0)
  kp, k1, k2, k3, k4 = jax.random.split(key, 5)

  params = init_params(kp, H=H, V=V, n_class=2)
  packed, layout = pack_params(params)          # one-time packing, lives in HBM
  emb = {"emb_src": params["emb_src"],
         "emb_node": params["emb_node"],
         "emb_tgt": params["emb_tgt"]}

  src_seq = jax.random.randint(k1, (B, Ls), 0, V)
  node_seq = jax.random.randint(k2, (B, Ln), 0, V)
  tgt_seq = jax.random.randint(k3, (B, Lt), 0, V)
  adj = (jax.random.uniform(k4, (B, Ln, Ln)) > 0.5).astype(jnp.float32)
  adj = adj + jnp.eye(Ln, dtype=jnp.float32)[None]
  adj = adj / jnp.sum(adj, axis=-1, keepdims=True)              # row-normalized

  inputs = {
      "seq-encoder": {
          "src_seq": src_seq,
          "lengths": jnp.full((B,), Ls, jnp.int32),
          "index": jnp.tile(jnp.arange(Ls, dtype=jnp.int32)[None], (B, 1)),
      },
      "node-encoder": {
          "src_seq": node_seq,
          "lengths": jnp.full((B,), Ln, jnp.int32),
      },
      "graph-encoder": {
          "edges": adj,
          "index": jnp.tile(jnp.arange(Ln, dtype=jnp.int32)[None], (B, 1)),
      },
      "encoder-transform": {},
      "decoder-transform": {},
      "decoder": {"tgt_seq": tgt_seq},
  }

  outputs = unified_forward(packed, emb, inputs, layout=layout, n_class=2,
                            model_type="unified")

  gen = jax.block_until_ready(outputs["generation"]["pred"])     # (B, Lt, V)
  cls = jax.block_until_ready(outputs["classification"])         # (B, Ls, 2)
  att = jax.block_until_ready(outputs["generation"]["attn"])     # (B, Lt, H)

  assert gen.shape == (B, Lt, V) and cls.shape == (B, Ls, 2) and att.shape == (B, Lt, H)
  assert bool(jnp.all(jnp.isfinite(gen))) and bool(jnp.all(jnp.isfinite(cls)))
  assert bool(jnp.all(jnp.isfinite(att)))
  print("KERNEL_OK")
</pallas_src>

<mosaic_0001>
module attributes {stable_mosaic.version = 11 : i64} {
  func.func @_fused_forward_kernel(%arg0: memref<48x32xf32, #tpu.memory_space<vmem>>, %arg1: memref<504x128xf32, #tpu.memory_space<vmem>>, %arg2: memref<2x8x8xf32, #tpu.memory_space<vmem>>, %arg3: memref<16x128xf32, #tpu.memory_space<vmem>>, %arg4: memref<16x128xf32, #tpu.memory_space<vmem>>) attributes {dimension_semantics = [], scalar_prefetch = 0 : i64, scratch_operands = 0 : i64, tpu.core_type = #tpu.core_type<tc>} {
    %c0 = arith.constant 0 : index
    %c0_0 = arith.constant 0 : index
    %0 = vector.load %arg0[%c0, %c0_0] : memref<48x32xf32, #tpu.memory_space<vmem>>, vector<48x32xf32>
    %1 = vector.extract_strided_slice %0 {offsets = [0, 0], sizes = [16, 32], strides = [1, 1]} : vector<48x32xf32> to vector<16x32xf32>
    %2 = vector.extract_strided_slice %0 {offsets = [16, 0], sizes = [16, 32], strides = [1, 1]} : vector<48x32xf32> to vector<16x32xf32>
    %3 = vector.extract_strided_slice %0 {offsets = [32, 0], sizes = [16, 32], strides = [1, 1]} : vector<48x32xf32> to vector<16x32xf32>
    %c0_1 = arith.constant 0 : index
    %c0_2 = arith.constant 0 : index
    %4 = vector.load %arg1[%c0_1, %c0_2] : memref<504x128xf32, #tpu.memory_space<vmem>>, vector<32x32xf32>
    %cst = arith.constant dense<0.000000e+00> : vector<16x32xf32>
    %5 = tpu.matmul %1, %4, %cst {dimension_numbers = #tpu.dot_dimension_numbers<[1], [0], [0], [1], [0, 0, 1, 1], [], []>} : vector<16x32xf32>, vector<32x32xf32>, vector<16x32xf32> -> vector<16x32xf32>
    %c416 = arith.constant 416 : index
    %c0_3 = arith.constant 0 : index
    %6 = vector.load %arg1[%c416, %c0_3] : memref<504x128xf32, #tpu.memory_space<vmem>>, vector<1x32xf32>
    %7 = vector.broadcast %6 : vector<1x32xf32> to vector<16x32xf32>
    %8 = arith.addf %5, %7 : vector<16x32xf32>
    %9 = math.tanh %8 : vector<16x32xf32>
    %10 = vector.shape_cast %9 : vector<16x32xf32> to vector<2x8x32xf32>
    %cst_4 = arith.constant dense<0.000000e+00> : vector<2x32xf32>
    %11 = vector.multi_reduction <add>, %10, %cst_4 [1] : vector<2x8x32xf32> to vector<2x32xf32>
    %cst_5 = arith.constant 1.250000e-01 : f32
    %12 = vector.broadcast %cst_5 : f32 to vector<2x32xf32>
    %13 = arith.mulf %11, %12 : vector<2x32xf32>
    %c32 = arith.constant 32 : index
    %c0_6 = arith.constant 0 : index
    %14 = vector.load %arg1[%c32, %c0_6] : memref<504x128xf32, #tpu.memory_space<vmem>>, vector<32x32xf32>
    %cst_7 = arith.constant dense<0.000000e+00> : vector<2x32xf32>
    %15 = tpu.matmul %13, %14, %cst_7 {dimension_numbers = #tpu.dot_dimension_numbers<[1], [0], [0], [1], [0, 0, 1, 1], [], []>} : vector<2x32xf32>, vector<32x32xf32>, vector<2x32xf32> -> vector<2x32xf32>
    %c424 = arith.constant 424 : index
    %c0_8 = arith.constant 0 : index
    %16 = vector.load %arg1[%c424, %c0_8] : memref<504x128xf32, #tpu.memory_space<vmem>>, vector<1x32xf32>
    %17 = vector.broadcast %16 : vector<1x32xf32> to vector<2x32xf32>
    %18 = arith.addf %15, %17 : vector<2x32xf32>
    %19 = math.tanh %18 : vector<2x32xf32>
    %c64 = arith.constant 64 : index
    %c0_9 = arith.constant 0 : index
    %20 = vector.load %arg1[%c64, %c0_9] : memref<504x128xf32, #tpu.memory_space<vmem>>, vector<32x32xf32>
    %cst_10 = arith.constant dense<0.000000e+00> : vector<16x32xf32>
    %21 = tpu.matmul %2, %20, %cst_10 {dimension_numbers = #tpu.dot_dimension_numbers<[1], [0], [0], [1], [0, 0, 1, 1], [], []>} : vector<16x32xf32>, vector<32x32xf32>, vector<16x32xf32> -> vector<16x32xf32>
    %c432 = arith.constant 432 : index
    %c0_11 = arith.constant 0 : index
    %22 = vector.load %arg1[%c432, %c0_11] : memref<504x128xf32, #tpu.memory_space<vmem>>, vector<1x32xf32>
    %23 = vector.broadcast %22 : vector<1x32xf32> to vector<16x32xf32>
    %24 = arith.addf %21, %23 : vector<16x32xf32>
    %25 = math.tanh %24 : vector<16x32xf32>
    %c96 = arith.constant 96 : index
    %c0_12 = arith.constant 0 : index
    %26 = vector.load %arg1[%c96, %c0_12] : memref<504x128xf32, #tpu.memory_space<vmem>>, vector<32x32xf32>
    %cst_13 = arith.constant dense<0.000000e+00> : vector<16x32xf32>
    %27 = tpu.matmul %25, %26, %cst_13 {dimension_numbers = #tpu.dot_dimension_numbers<[1], [0], [0], [1], [0, 0, 1, 1], [], []>} : vector<16x32xf32>, vector<32x32xf32>, vector<16x32xf32> -> vector<16x32xf32>
    %c440 = arith.constant 440 : index
    %c0_14 = arith.constant 0 : index
    %28 = vector.load %arg1[%c440, %c0_14] : memref<504x128xf32, #tpu.memory_space<vmem>>, vector<1x32xf32>
    %29 = vector.broadcast %28 : vector<1x32xf32> to vector<16x32xf32>
    %30 = arith.addf %27, %29 : vector<16x32xf32>
    %31 = math.tanh %30 : vector<16x32xf32>
    %32 = vector.shape_cast %31 : vector<16x32xf32> to vector<2x8x32xf32>
    %c0_15 = arith.constant 0 : index
    %c0_16 = arith.constant 0 : index
    %c0_17 = arith.constant 0 : index
    %33 = vector.load %arg2[%c0_15, %c0_16, %c0_17] : memref<2x8x8xf32, #tpu.memory_space<vmem>>, vector<2x8x8xf32>
    "tpu.trace_start"() <{level = 10 : i32, message = "bij,bjh->bih"}> : () -> ()
    %cst_18 = arith.constant dense<0.000000e+00> : vector<2x8x32xf32>
    %34 = tpu.matmul %33, %32, %cst_18 {dimension_numbers = #tpu.dot_dimension_numbers<[2], [1], [1], [2], [0, 0, 0, 1, 1, 2], [0], [0]>} : vector<2x8x8xf32>, vector<2x8x32xf32>, vector<2x8x32xf32> -> vector<2x8x32xf32>
    "tpu.trace_stop"() : () -> ()
    %35 = vector.shape_cast %34 : vector<2x8x32xf32> to vector<16x32xf32>
    %c128 = arith.constant 128 : index
    %c0_19 = arith.constant 0 : index
    %36 = vector.load %arg1[%c128, %c0_19] : memref<504x128xf32, #tpu.memory_space<vmem>>, vector<32x32xf32>
    %cst_20 = arith.constant dense<0.000000e+00> : vector<16x32xf32>
    %37 = tpu.matmul %35, %36, %cst_20 {dimension_numbers = #tpu.dot_dimension_numbers<[1], [0], [0], [1], [0, 0, 1, 1], [], []>} : vector<16x32xf32>, vector<32x32xf32>, vector<16x32xf32> -> vector<16x32xf32>
    %c448 = arith.constant 448 : index
    %c0_21 = arith.constant 0 : index
    %38 = vector.load %arg1[%c448, %c0_21] : memref<504x128xf32, #tpu.memory_space<vmem>>, vector<1x32xf32>
    %39 = vector.broadcast %38 : vector<1x32xf32> to vector<16x32xf32>
    %40 = arith.addf %37, %39 : vector<16x32xf32>
    %41 = arith.addf %40, %31 : vector<16x32xf32>
    %42 = math.tanh %41 : vector<16x32xf32>
    %43 = vector.shape_cast %42 : vector<16x32xf32> to vector<2x8x32xf32>
    %c352 = arith.constant 352 : index
    %c0_22 = arith.constant 0 : index
    %44 = vector.load %arg1[%c352, %c0_22] : memref<504x128xf32, #tpu.memory_space<vmem>>, vector<32x128xf32>
    %cst_23 = arith.constant dense<0.000000e+00> : vector<16x128xf32>
    %45 = tpu.matmul %9, %44, %cst_23 {dimension_numbers = #tpu.dot_dimension_numbers<[1], [0], [0], [1], [0, 0, 1, 1], [], []>} : vector<16x32xf32>, vector<32x128xf32>, vector<16x128xf32> -> vector<16x128xf32>
    %c496 = arith.constant 496 : index
    %c0_24 = arith.constant 0 : index
    %46 = vector.load %arg1[%c496, %c0_24] : memref<504x128xf32, #tpu.memory_space<vmem>>, vector<1x128xf32>
    %47 = vector.broadcast %46 : vector<1x128xf32> to vector<16x128xf32>
    %48 = arith.addf %45, %47 : vector<16x128xf32>
    %49 = vector.extract_strided_slice %48 {offsets = [0, 0], sizes = [16, 32], strides = [1, 1]} : vector<16x128xf32> to vector<16x32xf32>
    %50 = math.tanh %49 : vector<16x32xf32>
    %c0_25 = arith.constant 0 : index
    %c0_26 = arith.constant 0 : index
    %51 = vector.load %arg3[%c0_25, %c0_26] : memref<16x128xf32, #tpu.memory_space<vmem>>, vector<16x128xf32>
    tpu.vector_store %arg3[%c0_25, %c0_26], %48 {strides = array<i32>} : memref<16x128xf32, #tpu.memory_space<vmem>>, vector<16x128xf32>,
    %52 = vector.shape_cast %50 : vector<16x32xf32> to vector<2x8x32xf32>
    %c160 = arith.constant 160 : index
    %c0_27 = arith.constant 0 : index
    %53 = vector.load %arg1[%c160, %c0_27] : memref<504x128xf32, #tpu.memory_space<vmem>>, vector<32x32xf32>
    %cst_28 = arith.constant dense<0.000000e+00> : vector<2x32xf32>
    %54 = tpu.matmul %19, %53, %cst_28 {dimension_numbers = #tpu.dot_dimension_numbers<[1], [0], [0], [1], [0, 0, 1, 1], [], []>} : vector<2x32xf32>, vector<32x32xf32>, vector<2x32xf32> -> vector<2x32xf32>
    %c456 = arith.constant 456 : index
    %c0_29 = arith.constant 0 : index
    %55 = vector.load %arg1[%c456, %c0_29] : memref<504x128xf32, #tpu.memory_space<vmem>>, vector<1x32xf32>
    %56 = vector.broadcast %55 : vector<1x32xf32> to vector<2x32xf32>
    %57 = arith.addf %54, %56 : vector<2x32xf32>
    %58 = math.tanh %57 : vector<2x32xf32>
    %cst_30 = arith.constant dense<0.000000e+00> : vector<2x32xf32>
    %59 = vector.multi_reduction <add>, %43, %cst_30 [1] : vector<2x8x32xf32> to vector<2x32xf32>
    %cst_31 = arith.constant 1.250000e-01 : f32
    %60 = vector.broadcast %cst_31 : f32 to vector<2x32xf32>
    %61 = arith.mulf %59, %60 : vector<2x32xf32>
    %c192 = arith.constant 192 : index
    %c0_32 = arith.constant 0 : index
    %62 = vector.load %arg1[%c192, %c0_32] : memref<504x128xf32, #tpu.memory_space<vmem>>, vector<32x32xf32>
    %cst_33 = arith.constant dense<0.000000e+00> : vector<2x32xf32>
    %63 = tpu.matmul %61, %62, %cst_33 {dimension_numbers = #tpu.dot_dimension_numbers<[1], [0], [0], [1], [0, 0, 1, 1], [], []>} : vector<2x32xf32>, vector<32x32xf32>, vector<2x32xf32> -> vector<2x32xf32>
    %c464 = arith.constant 464 : index
    %c0_34 = arith.constant 0 : index
    %64 = vector.load %arg1[%c464, %c0_34] : memref<504x128xf32, #tpu.memory_space<vmem>>, vector<1x32xf32>
    %65 = vector.broadcast %64 : vector<1x32xf32> to vector<2x32xf32>
    %66 = arith.addf %63, %65 : vector<2x32xf32>
    %67 = math.tanh %66 : vector<2x32xf32>
    %c224 = arith.constant 224 : index
    %c0_35 = arith.constant 0 : index
    %68 = vector.load %arg1[%c224, %c0_35] : memref<504x128xf32, #tpu.memory_space<vmem>>, vector<32x32xf32>
    %cst_36 = arith.constant dense<0.000000e+00> : vector<16x32xf32>
    %69 = tpu.matmul %3, %68, %cst_36 {dimension_numbers = #tpu.dot_dimension_numbers<[1], [0], [0], [1], [0, 0, 1, 1], [], []>} : vector<16x32xf32>, vector<32x32xf32>, vector<16x32xf32> -> vector<16x32xf32>
    %c472 = arith.constant 472 : index
    %c0_37 = arith.constant 0 : index
    %70 = vector.load %arg1[%c472, %c0_37] : memref<504x128xf32, #tpu.memory_space<vmem>>, vector<1x32xf32>
    %71 = vector.broadcast %70 : vector<1x32xf32> to vector<16x32xf32>
    %72 = arith.addf %69, %71 : vector<16x32xf32>
    %73 = math.tanh %72 : vector<16x32xf32>
    %74 = vector.shape_cast %73 : vector<16x32xf32> to vector<2x8x32xf32>
    %75 = arith.addf %58, %67 : vector<2x32xf32>
    %76 = vector.shape_cast %75 : vector<2x32xf32> to vector<2x1x32xf32>
    %77 = vector.broadcast %76 : vector<2x1x32xf32> to vector<2x8x32xf32>
    %78 = arith.addf %74, %77 : vector<2x8x32xf32>
    %cst_38 = arith.constant 0.176776692 : f32
    %79 = vector.broadcast %cst_38 : f32 to vector<2x8x32xf32>
    %80 = arith.mulf %78, %79 : vector<2x8x32xf32>
    "tpu.trace_start"() <{level = 10 : i32, message = "bqh,bkh->bqk"}> : () -> ()
    %cst_39 = arith.constant dense<0.000000e+00> : vector<2x8x8xf32>
    %81 = tpu.matmul %80, %52, %cst_39 {dimension_numbers = #tpu.dot_dimension_numbers<[2], [2], [1], [1], [0, 0, 0, 1, 1, 1], [0], [0]>} : vector<2x8x32xf32>, vector<2x8x32xf32>, vector<2x8x8xf32> -> vector<2x8x8xf32>
    "tpu.trace_stop"() : () -> ()
    %cst_40 = arith.constant dense<0xFF800000> : vector<2x8xf32>
    %82 = vector.multi_reduction <maximumf>, %81, %cst_40 [2] : vector<2x8x8xf32> to vector<2x8xf32>
    %83 = vector.shape_cast %82 : vector<2x8xf32> to vector<2x8x1xf32>
    %84 = vector.broadcast %83 : vector<2x8x1xf32> to vector<2x8x8xf32>
    %85 = arith.subf %81, %84 : vector<2x8x8xf32>
    %86 = math.exp %85 : vector<2x8x8xf32>
    %cst_41 = arith.constant dense<0.000000e+00> : vector<2x8xf32>
    %87 = vector.multi_reduction <add>, %86, %cst_41 [2] : vector<2x8x8xf32> to vector<2x8xf32>
    %88 = vector.shape_cast %87 : vector<2x8xf32> to vector<2x8x1xf32>
    %89 = tpu.reciprocal %88 : vector<2x8x1xf32> -> vector<2x8x1xf32>
    %90 = vector.broadcast %89 : vector<2x8x1xf32> to vector<2x8x8xf32>
    %91 = arith.mulf %86, %90 : vector<2x8x8xf32>
    "tpu.trace_start"() <{level = 10 : i32, message = "bqk,bkh->bqh"}> : () -> ()
    %cst_42 = arith.constant dense<0.000000e+00> : vector<2x8x32xf32>
    %92 = tpu.matmul %91, %52, %cst_42 {dimension_numbers = #tpu.dot_dimension_numbers<[2], [1], [1], [2], [0, 0, 0, 1, 1, 2], [0], [0]>} : vector<2x8x8xf32>, vector<2x8x32xf32>, vector<2x8x32xf32> -> vector<2x8x32xf32>
    "tpu.trace_stop"() : () -> ()
    %93 = vector.shape_cast %92 : vector<2x8x32xf32> to vector<16x32xf32>
    "tpu.trace_start"() <{level = 10 : i32, message = "bqh,bkh->bqk"}> : () -> ()
    %cst_43 = arith.constant dense<0.000000e+00> : vector<2x8x8xf32>
    %94 = tpu.matmul %80, %43, %cst_43 {dimension_numbers = #tpu.dot_dimension_numbers<[2], [2], [1], [1], [0, 0, 0, 1, 1, 1], [0], [0]>} : vector<2x8x32xf32>, vector<2x8x32xf32>, vector<2x8x8xf32> -> vector<2x8x8xf32>
    "tpu.trace_stop"() : () -> ()
    %cst_44 = arith.constant dense<0xFF800000> : vector<2x8xf32>
    %95 = vector.multi_reduction <maximumf>, %94, %cst_44 [2] : vector<2x8x8xf32> to vector<2x8xf32>
    %96 = vector.shape_cast %95 : vector<2x8xf32> to vector<2x8x1xf32>
    %97 = vector.broadcast %96 : vector<2x8x1xf32> to vector<2x8x8xf32>
    %98 = arith.subf %94, %97 : vector<2x8x8xf32>
    %99 = math.exp %98 : vector<2x8x8xf32>
    %cst_45 = arith.constant dense<0.000000e+00> : vector<2x8xf32>
    %100 = vector.multi_reduction <add>, %99, %cst_45 [2] : vector<2x8x8xf32> to vector<2x8xf32>
    %101 = vector.shape_cast %100 : vector<2x8xf32> to vector<2x8x1xf32>
    %102 = tpu.reciprocal %101 : vector<2x8x1xf32> -> vector<2x8x1xf32>
    %103 = vector.broadcast %102 : vector<2x8x1xf32> to vector<2x8x8xf32>
    %104 = arith.mulf %99, %103 : vector<2x8x8xf32>
    "tpu.trace_start"() <{level = 10 : i32, message = "bqk,bkh->bqh"}> : () -> ()
    %cst_46 = arith.constant dense<0.000000e+00> : vector<2x8x32xf32>
    %105 = tpu.matmul %104, %43, %cst_46 {dimension_numbers = #tpu.dot_dimension_numbers<[2], [1], [1], [2], [0, 0, 0, 1, 1, 2], [0], [0]>} : vector<2x8x8xf32>, vector<2x8x32xf32>, vector<2x8x32xf32> -> vector<2x8x32xf32>
    "tpu.trace_stop"() : () -> ()
    %106 = vector.shape_cast %105 : vector<2x8x32xf32> to vector<16x32xf32>
    %107 = vector.shape_cast %78 : vector<2x8x32xf32> to vector<16x32xf32>
    %108 = tpu.concatenate %107, %93, %106 in 1 : vector<16x32xf32>, vector<16x32xf32>, vector<16x32xf32> -> vector<16x96xf32>
    %c256 = arith.constant 256 : index
    %c0_47 = arith.constant 0 : index
    %109 = vector.load %arg1[%c256, %c0_47] : memref<504x128xf32, #tpu.memory_space<vmem>>, vector<96x32xf32>
    %cst_48 = arith.constant dense<0.000000e+00> : vector<16x32xf32>
    %110 = tpu.matmul %108, %109, %cst_48 {dimension_numbers = #tpu.dot_dimension_numbers<[1], [0], [0], [1], [0, 0, 1, 1], [], []>} : vector<16x96xf32>, vector<96x32xf32>, vector<16x32xf32> -> vector<16x32xf32>
    %c480 = arith.constant 480 : index
    %c0_49 = arith.constant 0 : index
    %111 = vector.load %arg1[%c480, %c0_49] : memref<504x128xf32, #tpu.memory_space<vmem>>, vector<1x32xf32>
    %112 = vector.broadcast %111 : vector<1x32xf32> to vector<16x32xf32>
    %113 = arith.addf %110, %112 : vector<16x32xf32>
    %114 = math.tanh %113 : vector<16x32xf32>
    %c384 = arith.constant 384 : index
    %c0_50 = arith.constant 0 : index
    %115 = vector.load %arg1[%c384, %c0_50] : memref<504x128xf32, #tpu.memory_space<vmem>>, vector<32x64xf32>
    %cst_51 = arith.constant dense<0.000000e+00> : vector<16x64xf32>
    %116 = tpu.matmul %114, %115, %cst_51 {dimension_numbers = #tpu.dot_dimension_numbers<[1], [0], [0], [1], [0, 0, 1, 1], [], []>} : vector<16x32xf32>, vector<32x64xf32>, vector<16x64xf32> -> vector<16x64xf32>
    %c488 = arith.constant 488 : index
    %c0_52 = arith.constant 0 : index
    %117 = vector.load %arg1[%c488, %c0_52] : memref<504x128xf32, #tpu.memory_space<vmem>>, vector<1x64xf32>
    %118 = vector.broadcast %117 : vector<1x64xf32> to vector<16x64xf32>
    %119 = arith.addf %116, %118 : vector<16x64xf32>
    %120 = tpu.concatenate %119, %93, %114 in 1 : vector<16x64xf32>, vector<16x32xf32>, vector<16x32xf32> -> vector<16x128xf32>
    %c0_53 = arith.constant 0 : index
    %c0_54 = arith.constant 0 : index
    %121 = vector.load %arg4[%c0_53, %c0_54] : memref<16x128xf32, #tpu.memory_space<vmem>>, vector<16x128xf32>
    tpu.vector_store %arg4[%c0_53, %c0_54], %120 {strides = array<i32>} : memref<16x128xf32, #tpu.memory_space<vmem>>, vector<16x128xf32>,
    return
  }
}

</mosaic_0001>

<bundles_post_ra>
// kernel: unified_forward.1
= control target key start
LH: loop header
LB: loop body
LE: loop exit
PB: predicated region body
PF: predicated region fallthrough
CT: control target
= control target key end

     0   :  { %vm31_vm0 = vcmask 261120   ;;  %v2401_v18 = vmov 0.0|0.0   ;;  %vm2402_vm1 = vmmov 0   ;;  %v2403_v23 = vmov 0.0   ;;  %s2405_s17 = smov 32   ;;  %s2406_s18 = smov 64   ;;  %s2801_s1 = inlined_call_operand.vmem [shape: f32[504,128], index: 1, kind: input, shape index: {}]   ;;  %s2802_s0 = inlined_call_operand.vmem [shape: f32[48,32], index: 0, kind: input, shape index: {}]   ;;  %s2803_s2 = inlined_call_operand.vmem [shape: f32[2,8,8], index: 2, kind: input, shape index: {}]   ;;  %s2804_s3 = inlined_call_operand.vmem [shape: f32[16,128], index: 3, kind: output, shape index: {0}]   ;;  %s2805_s4 = inlined_call_operand.vmem [shape: f32[16,128], index: 4, kind: output, shape index: {1}]  }
   0x1   :  { %v22_v0 = vld [vmem:[%s2801_s1] sm:$0xff]  ;;  %v23_v1 = vld [vmem:[%s2801_s1 + $0x8] sm:$0xff]  ;;  %v24_v2 = vld [vmem:[%s2801_s1 + $0x10] sm:$0xff]  ;;  %vm142_vm2 = vcmask 1041409   ;;  %vm403_vm3 = vcmask 64512   ;;  %vm1704_vm4 = vcmask 523264  }
   0x2   :  { %v2246_v3 = vpack.c.bf16 %v23_v1, %v22_v0  ;;  %v25_v4 = vld [vmem:[%s2801_s1 + $0x18] sm:$0xff]  ;;  %v16_v5 = vld [vmem:[%s2802_s0] sm:$0xff]  ;;  %v218_v8 = vld [vmem:[%s2801_s1 + $0x48] sm:$0xff]  ;;  %vm1724_vm5 = vcmask 785408   ;;  %s2407_s24 = smov 96  }
   0x3   :  { %v2250_v6 = vpack.c.bf16 %v25_v4, %v24_v2  ;;  %2067 = vmatprep.mubr.msk.f32.mxu1 %vm31_vm0, %v16_v5  ;;  %v217_v7 = vld [vmem:[%s2801_s1 + $0x40] sm:$0xff]  ;;  %v219_v9 = vld [vmem:[%s2801_s1 + $0x50] sm:$0xff]  ;;  %v220_v11 = vld [vmem:[%s2801_s1 + $0x58] sm:$0xff] }
   0x4   :  { %2247 = vmatprep.subr.bf16.mxu1 %v2246_v3  ;;  %v2260_v10 = vpack.c.bf16 %v218_v8, %v217_v7  ;;  %v18_v12 = vld [vmem:[%s2802_s0 + $0x10] sm:$0xff]  ;;  %v2264_v13 = vpack.c.bf16 %v220_v11, %v219_v9  ;;  %v17_v14 = vld [vmem:[%s2802_s0 + $0x8] sm:$0xff]  ;;  %v19_v15 = vld [vmem:[%s2802_s0 + $0x18] sm:$0xff] }
   0x5   :  { %2249 = vmatpush3.bf16.msra.mxu1 %v2246_v3  ;;  %2089 = vmatprep.mubr.msk.f32.mxu0 %vm31_vm0, %v18_v12  ;;  %v131_v16 = vld [vmem:[%s2801_s1 + $0x20] sm:$0xff]  ;;  %v132_v17 = vld [vmem:[%s2801_s1 + $0x28] sm:$0xff]  ;;  %v133_v20 = vld [vmem:[%s2801_s1 + $0x30] sm:$0xff] }
   0x6   :  { %2251 = vmatprep.subr.bf16.mxu1 %v2250_v6  ;;  %2261 = vmatprep.subr.bf16.mxu0 %v2260_v10  ;;  %v2255_v19 = vpack.c.bf16 %v132_v17, %v131_v16  ;;  %v134_v21 = vld [vmem:[%s2801_s1 + $0x38] sm:$0xff]  ;;  %v309_v22 = vld [vmem:[%s2801_s1 + $0x60] sm:$0xff]  ;;  %v310_v24 = vld [vmem:[%s2801_s1 + $0x68] sm:$0xff] }
   0x7   :  { %2263 = vmatpush3.bf16.msra.mxu0 %v2260_v10  ;;  %v2258_v25 = vpack.c.bf16 %v134_v21, %v133_v20  ;;  %v2268_v26 = vpack.c.bf16 %v310_v24, %v309_v22  ;;  %v1924_v27 = vld [vmem:[%s2801_s1 + $0x1a0] ss:$0 sm:$0xff]  ;;  %v1929_v34 = vld [vmem:[%s2801_s1 + $0x1b0] ss:$0 sm:$0xff]  ;;  %v312_v54 = vld [vmem:[%s2801_s1 + $0x78] sm:$0xff] }
   0x8   :  { %2265 = vmatprep.subr.bf16.mxu0 %v2264_v13  ;;  %v311_v53 = vld [vmem:[%s2801_s1 + $0x70] sm:$0xff]  ;;  %v1932_v63 = vld [vmem:[%s2801_s1 + $0x1b8] ss:$0 sm:$0xff]  ;;  %v644_v4 = vld [vmem:[%s2801_s1 + $0x160] sm:$0xff] }
   0x9   :  { %2253 = vmatpush3.bf16.msra.mxu1 %v2250_v6  ;;  %v2272_v58 = vpack.c.bf16 %v312_v54, %v311_v53  ;;  %v645_v5 = vld [vmem:[%s2801_s1 + $0x168] sm:$0xff]  ;;  %v646_v6 = vld [vmem:[%s2801_s1 + $0x170] sm:$0xff]  ;;  %v647_v7 = vld [vmem:[%s2801_s1 + $0x178] sm:$0xff] }
   0xa   :  { %2254 = vmatprep.subr.bf16.mxu1 %v2401_v18  ;;  %v550_v8 = vld [vmem:[%s2801_s1 + $0x80] sm:$0xff]  ;;  %v551_v9 = vld [vmem:[%s2801_s1 + $0x88] sm:$0xff]  ;;  %v2284_v11 = vpack.c.bf16 %v645_v5, %v644_v4  ;;  %v2288_v17 = vpack.c.bf16 %v647_v7, %v646_v6  ;;  %v840_v53 = vld [vmem:[%s2801_s1 + $0xd8] sm:$0xff] }
   0xb   :  { %2267 = vmatpush3.bf16.msra.mxu0 %v2264_v13  ;;  %v402_v10 = vld [vmem:[%s2803_s2 + $0x8] sm:$0xff]  ;;  %v401_v13 = vld [vmem:[%s2803_s2] sm:$0xff] }
   0xc   :  { %2068 = vmatmul.mubr.msk.f32.vlgmr.msra.gmra.mrb[0].mxu1 %vm31_vm0, %v17_v14  ;;  %2103 = vmatprep.subr.mxu0 %v2403_v23  ;;  %v552_v14 = vld [vmem:[%s2801_s1 + $0x90] sm:$0xff]  ;;  %v1927_v21 = vld [vmem:[%s2801_s1 + $0x1a8] ss:$0 sm:$0xff]  ;;  %v738_v24 = vld [vmem:[%s2801_s1 + $0xa0] sm:$0xff] }
   0xd   :  { %2078 = vmatprep.mubr.msk.f32.mxu1 %vm2402_vm1, %v2403_v23  ;;  %2256 = vmatpush3.bf16.msra.mxu1 %v2255_v19  ;;  %v2276_v19 = vpack.c.bf16 %v551_v9, %v550_v8 }
   0xe   :  { %2090 = vmatmul.mubr.msk.f32.vlgmr.msra.gmra.mrb[0].mxu0 %vm31_vm0, %v19_v15  ;;  %2257 = vmatprep.subr.bf16.mxu1 %v2401_v18  ;;  %v553_v15 = vld [vmem:[%s2801_s1 + $0x98] sm:$0xff] }
   0xf   :  { %2105 = vmatprep.mubr.msk.f32.mxu0 %vm2402_vm1, %v2403_v23  ;;  %v2280_v20 = vpack.c.bf16 %v553_v15, %v552_v14 }
  0x11   :  { %2259 = vmatpush3.bf16.msra.mxu1 %v2258_v25  ;;  %v739_v25 = vld [vmem:[%s2801_s1 + $0xa8] sm:$0xff] }
  0x12   :  { %2269 = vmatprep.subr.bf16.mxu1 %v2268_v26 }
  0xdf   :  { %v2069_v28 = vpop.f32.mrb[0].mxu1 }
  0xe0   :  { %v110_v29 = vadd.f32 %v2069_v28, %v1924_v27  ;;  %v104_v30 = vpop.f32.mrb[1].mxu1 }
  0xe1   :  { %v105_v31 = vadd.f32 %v1924_v27, %v104_v30  ;;  %v2091_v32 = vpop.f32.mrb[0].mxu0  ;;  %v2293_v27 = vpack.c.bf16 %v739_v25, %v738_v24  ;;  %v740_v30 = vld [vmem:[%s2801_s1 + $0xb0] sm:$0xff] }
  0xe2   :  { %2351 = vtanh.f32 %v110_v29  ;;  %v298_v33 = vpop.f32.mrb[1].mxu0  ;;  %v304_v49 = vadd.f32 %v2091_v32, %v1929_v34  ;;  %v1945_v24 = vld [vmem:[%s2801_s1 + $0x1d0] ss:$0 sm:$0xff] }
  0xe3   :  { %2353 = vtanh.f32 %v105_v31  ;;  %v299_v40 = vadd.f32 %v1929_v34, %v298_v33  ;;  %v741_v31 = vld [vmem:[%s2801_s1 + $0xb8] sm:$0xff]  ;;  %v922_v33 = vld [vmem:[%s2801_s1 + $0xe0] sm:$0xff]  ;;  %v923_v34 = vld [vmem:[%s2801_s1 + $0xe8] sm:$0xff] }
  0xe5   :  { %2355 = vtanh.f32 %v299_v40 }
  0xe6   :  { %2357 = vtanh.f32 %v304_v49  ;;  %v837_v49 = vld [vmem:[%s2801_s1 + $0xc0] sm:$0xff] }
  0xec   :  { %v2504_v35 = vpop.eup %2351 }
  0xed   :  { %v2506_v36 = vpop.eup %2353  ;;  %v122_v37 = vsel %vm31_vm0, %v2504_v35, 0.0 }
  0xee   :  { %v123_v38 = vrot.slane %v122_v37, 4  ;;  %v115_v39 = vsel %vm31_vm0, %v2506_v36, 0.0 }
  0xef   :  { %v116_v41 = vrot.slane %v115_v39, 4  ;;  %v2356_v57 = vpop.eup %2355 }
  0xf0   :  { %v124_v42 = vadd.f32 %v123_v38, %v122_v37  ;;  %v2358_v60 = vpop.eup %2357  ;;  %v924_v37 = vld [vmem:[%s2801_s1 + $0xf0] sm:$0xff]  ;;  %v925_v38 = vld [vmem:[%s2801_s1 + $0xf8] sm:$0xff] }
  0xf1   :  { %v117_v43 = vadd.f32 %v116_v41, %v115_v39  ;;  %v1940_v39 = vld [vmem:[%s2801_s1 + $0x1f0] ss:$0 sm:$0xff]  ;;  %v2308_v41 = vpack.c.bf16 %v925_v38, %v924_v37 }
  0xf2   :  { %v125_v44 = vrot.slane %v124_v42, 2 }
  0xf3   :  { %v118_v45 = vrot.slane %v117_v43, 2 }
  0xf4   :  { %v126_v46 = vadd.f32 %v125_v44, %v124_v42  ;;  %v20_v42 = vld [vmem:[%s2802_s0 + $0x20] sm:$0xff] }
  0xf5   :  { %v119_v47 = vadd.f32 %v118_v45, %v117_v43 }
  0xf6   :  { %v127_v48 = vrot.slane %v126_v46, 1 }
  0xf7   :  { %v120_v50 = vrot.slane %v119_v47, 1 }
  0xf8   :  { %v128_v51 = vadd.f32 %v127_v48, %v126_v46 }
  0xf9   :  { %v121_v52 = vadd.f32 %v120_v50, %v119_v47  ;;  %v21_v47 = vld [vmem:[%s2802_s0 + $0x28] sm:$0xff] }
  0xfa   :  { %v130_v55 = vmul.f32 0.125, %v128_v51  ;;  %v838_v50 = vld [vmem:[%s2801_s1 + $0xc8] sm:$0xff]  ;;  %v839_v51 = vld [vmem:[%s2801_s1 + $0xd0] sm:$0xff] }
  0xfb   :  { %v129_v56 = vmul.f32 0.125, %v121_v52  ;;  %v2299_v52 = vpack.c.bf16 %v838_v50, %v837_v49  ;;  %v2302_v54 = vpack.c.bf16 %v840_v53, %v839_v51 }
  0xfd   :  { %v143_v59 = vsel %vm142_vm2, %v130_v55, %v129_v56  ;;  %v1937_v55 = vld [vmem:[%s2801_s1 + $0x1c0] ss:$0 sm:$0xff] }
  0xfe   :  { %2079 = vmatmul.mubr.msk.f32.vlgmr.msra.gmra.mrb[2].mxu1 %vm31_vm0, %v143_v59 }
  0xff   :  { %2271 = vmatpush3.bf16.msra.mxu1 %v2268_v26  ;;  %2100 = vmatprep.mubr.msk.f32.mxu1 %vm31_vm0, %v2356_v57 }
 0x100   :  { %2273 = vmatprep.subr.bf16.mxu1 %v2272_v58 }
 0x103   :  { %2275 = vmatpush3.bf16.msra.mxu1 %v2272_v58 }
 0x104   :  { %2108 = vmatprep.subr.mxu1 %v2403_v23 }
 0x106   :  { %2101 = vmatmul.mubr.msk.f32.vlgmr.msra.gmra.mrb[4].mxu1 %vm31_vm0, %v2358_v60 }
 0x107   :  { %2110 = vmatprep.mubr.msk.f32.mxu1 %vm2402_vm1, %v2403_v23 }
 0x1d1   :  { %v212_v61 = vpop.f32.mrb[2].mxu1 }
 0x1d2   :  { %v2080_v62 = vpop.f32.mrb[3].mxu1  ;;  %v213_v22 = vadd.f32 %v1927_v21, %v212_v61  ;;  %v1943_v21 = vld [vmem:[%s2801_s1 + $0x1c8] ss:$0 sm:$0xff] }
 0x1d9   :  { %v2102_v0 = vpop.f32.mrb[4].mxu1 }
 0x1da   :  { %v396_v1 = vadd.f32 %v2102_v0, %v1932_v63  ;;  %v390_v2 = vpop.f32.mrb[5].mxu1 }
 0x1db   :  { %v391_v3 = vadd.f32 %v1932_v63, %v390_v2 }
 0x1dc   :  { %2359 = vtanh.f32 %v396_v1 }
 0x1dd   :  { %2361 = vtanh.f32 %v391_v3 }
 0x1de   :  { %2363 = vtanh.f32 %v213_v22 }
 0x1e6   :  { %v2549_v12 = vpop.eup %2359 }
 0x1e7   :  { %v2560_v16 = vpop.eup %2361  ;;  %2109 = vmatpush3.msra.mxu1 %v2549_v12 }
 0x1e8   :  { %2104 = vmatpush3.msra.mxu0 %v2560_v16  ;;  %2111 = vmatmul.mubr.msk.f32.vlgmr.msra.gmra.mrb[6].mxu1 %vm403_vm3, %v402_v10  ;;  %v2364_v43 = vpop.eup %2363 }
 0x1e9   :  { %2285 = vmatprep.subr.bf16.mxu1 %v2284_v11  ;;  %2106 = vmatmul.mubr.msk.f32.vlgmr.msra.gmra.mrb[2].mxu0 %vm403_vm3, %v401_v13 }
 0x1ea   :  { %2287 = vmatpush3.bf16.msra.mxu1 %v2284_v11  ;;  %2132 = vmatprep.mubr.msk.f32.mxu1 %vm31_vm0, %v2506_v36  ;;  %v2304_v36 = vpack.c.bf16 %v923_v34, %v922_v33 }
 0x1eb   :  { %2289 = vmatprep.subr.bf16.mxu1 %v2288_v17  ;;  %2277 = vmatprep.subr.bf16.mxu0 %v2276_v19 }
 0x1ec   :  { %2279 = vmatpush3.bf16.msra.mxu0 %v2276_v19 }
 0x1ed   :  { %2281 = vmatprep.subr.bf16.mxu0 %v2280_v20 }
 0x1ee   :  { %2291 = vmatpush3.bf16.msra.mxu1 %v2288_v17 }
 0x1ef   :  { %2298 = vmatprep.subr.bf16.mxu1 %v2401_v18 }
 0x1f0   :  { %2283 = vmatpush3.bf16.msra.mxu0 %v2280_v20 }
 0x1f1   :  { %2133 = vmatmul.mubr.msk.f32.vlgmr.msra.gmra.mrb[8].mxu1 %vm31_vm0, %v2504_v35  ;;  %2292 = vmatprep.subr.bf16.mxu0 %v2401_v18  ;;  %v2296_v35 = vpack.c.bf16 %v741_v31, %v740_v30  ;;  %v1019_v31 = vlaneseq }
 0x1f2   :  { %2154 = vmatprep.mubr.msk.f32.mxu1 %vm2402_vm1, %v2403_v23  ;;  %2300 = vmatpush3.bf16.msra.mxu1 %v2299_v52 }
 0x1f3   :  { %2301 = vmatprep.subr.bf16.mxu1 %v2401_v18  ;;  %v1020_v34 = vshrl.u32 %v1019_v31, 7 }
 0x1f6   :  { %2303 = vmatpush3.bf16.msra.mxu1 %v2302_v54 }
 0x1f7   :  { %2168 = vmatprep.subr.mxu1 %v2403_v23 }
 0x2bb   :  { %v546_v26 = vpop.f32.mrb[6].mxu1 }
 0x2bc   :  { %v473_v28 = vpop.f32.mrb[2].mxu0  ;;  %v2112_v29 = vpop.f32.mrb[7].mxu1 }
 0x2bd   :  { %2121 = vmatprep.mubr.msk.f32.mxu0 %vm31_vm0, %v473_v28  ;;  %v2107_v32 = vpop.f32.mrb[3].mxu0  ;;  %v1947_v28 = vld [vmem:[%s2801_s1 + $0x1d8] ss:$0 sm:$0xff]  ;;  %v2404_v29 = vmov 1966171168  }
 0x2be   :  { %2122 = vmatmul.mubr.msk.f32.vlgmr.msra.gmra.mrb[4].mxu0 %vm31_vm0, %v546_v26  ;;  %v1017_v30 = vunpack.c.l.s4 %v2404_v29 }
 0x2bf   :  { %2294 = vmatpush3.bf16.msra.mxu0 %v2293_v27  ;;  %2143 = vmatprep.mubr.msk.f32.mxu0 %vm2402_vm1, %v2403_v23 }
 0x2c0   :  { %2295 = vmatprep.subr.bf16.mxu0 %v2401_v18  ;;  %v1018_v33 = vunpack.c.0.s8 %v1017_v30 }
 0x2c2   :  { %v1021_v37 = vsub.s32 %v1018_v33, %v1020_v34 }
 0x2c3   :  { %2297 = vmatpush3.bf16.msra.mxu0 %v2296_v35 }
 0x2c4   :  { %v2134_v40 = vpop.f32.mrb[8].mxu1  ;;  %2305 = vmatprep.subr.bf16.mxu0 %v2304_v36 }
 0x2c5   :  { %v2612_v44 = vadd.f32 %v2134_v40, %v1940_v39  ;;  %v725_v45 = vpop.f32.mrb[9].mxu1 }
 0x2c6   :  { %v726_v46 = vadd.f32 %v1940_v39, %v725_v45  ;;  %2144 = vmatmul.mubr.msk.f32.vlgmr.msra.gmra.mrb[6].mxu0 %vm31_vm0, %v2364_v43 }
 0x2c7   :  { %737 = vst [vmem:[%s2804_s3 + $0x8] sm:$0xff] %v2612_v44  ;;  %2307 = vmatpush3.bf16.msra.mxu0 %v2304_v36  ;;  %2165 = vmatprep.mubr.msk.f32.mxu0 %vm31_vm0, %v20_v42 }
 0x2c8   :  { %2365 = vtanh.f32 %v726_v46  ;;  %736 = vst [vmem:[%s2804_s3] sm:$0xff] %v726_v46  ;;  %2309 = vmatprep.subr.bf16.mxu0 %v2308_v41 }
 0x2cb   :  { %2311 = vmatpush3.bf16.msra.mxu0 %v2308_v41  ;;  %v1040_v41 = vsub.s32 0, %v1020_v34 }
 0x2cc   :  { %2178 = vmatprep.subr.mxu0 %v2403_v23 }
 0x2ce   :  { %2166 = vmatmul.mubr.msk.f32.vlgmr.msra.gmra.mrb[8].mxu0 %vm31_vm0, %v21_v47 }
 0x2cf   :  { %2180 = vmatprep.mubr.msk.f32.mxu0 %vm2402_vm1, %v2403_v23 }
 0x2d2   :  { %v2366_v48 = vpop.eup %2365 }
 0x2d3   :  { %2179 = vmatpush3.msra.mxu0 %v2366_v48 }
 0x2d4   :  { %2188 = vmatprep.subr.mxu0 %v2403_v23 }
 0x391   :  { %v2123_v56 = vpop.f32.mrb[4].mxu0 }
 0x392   :  { %v637_v57 = vadd.f32 %v2123_v56, %v1937_v55  ;;  %v631_v58 = vpop.f32.mrb[5].mxu0 }
 0x393   :  { %v632_v59 = vadd.f32 %v1937_v55, %v631_v58 }
 0x394   :  { %v641_v60 = vadd.f32 %v2549_v12, %v637_v57 }
 0x395   :  { %v640_v61 = vadd.f32 %v2560_v16, %v632_v59 }
 0x396   :  { %2367 = vtanh.f32 %v641_v60 }
 0x397   :  { %2369 = vtanh.f32 %v640_v61 }
 0x399   :  { %v816_v62 = vpop.f32.mrb[6].mxu0 }
 0x39a   :  { %v2145_v63 = vpop.f32.mrb[7].mxu0  ;;  %v817_v22 = vadd.f32 %v1943_v21, %v816_v62 }
 0x39c   :  { %2371 = vtanh.f32 %v817_v22 }
 0x3a0   :  { %v2650_v18 = vpop.eup %2367 }
 0x3a1   :  { %v2652_v0 = vpop.eup %2369  ;;  %v828_v1 = vsel %vm31_vm0, %v2650_v18, 0.0  ;;  %v2167_v19 = vpop.f32.mrb[8].mxu0 }
 0x3a2   :  { %v821_v2 = vsel %vm31_vm0, %v2652_v0, 0.0  ;;  %v829_v3 = vrot.slane %v828_v1, 4  ;;  %v1003_v20 = vpop.f32.mrb[9].mxu0  ;;  %v1009_v35 = vadd.f32 %v2167_v19, %v1947_v28 }
 0x3a3   :  { %v822_v4 = vrot.slane %v821_v2, 4  ;;  %v1004_v32 = vadd.f32 %v1947_v28, %v1003_v20 }
 0x3a4   :  { %v830_v5 = vadd.f32 %v829_v3, %v828_v1 }
 0x3a5   :  { %v823_v6 = vadd.f32 %v822_v4, %v821_v2 }
 0x3a6   :  { %v831_v7 = vrot.slane %v830_v5, 2  ;;  %v2372_v36 = vpop.eup %2371 }
 0x3a7   :  { %v824_v8 = vrot.slane %v823_v6, 2 }
 0x3a8   :  { %v832_v9 = vadd.f32 %v831_v7, %v830_v5 }
 0x3a9   :  { %v825_v10 = vadd.f32 %v824_v8, %v823_v6 }
 0x3aa   :  { %v833_v11 = vrot.slane %v832_v9, 1 }
 0x3ab   :  { %v826_v12 = vrot.slane %v825_v10, 1 }
 0x3ac   :  { %v834_v13 = vadd.f32 %v833_v11, %v832_v9 }
 0x3ad   :  { %v827_v14 = vadd.f32 %v826_v12, %v825_v10 }
 0x3ae   :  { %v836_v15 = vmul.f32 0.125, %v834_v13 }
 0x3af   :  { %v835_v16 = vmul.f32 0.125, %v827_v14 }
 0x3b1   :  { %v848_v17 = vsel %vm142_vm2, %v836_v15, %v835_v16 }
 0x3b2   :  { %2155 = vmatmul.mubr.msk.f32.vlgmr.msra.gmra.mrb[10].mxu1 %vm31_vm0, %v848_v17 }
 0x3b3   :  { %2169 = vmatpush3.xpose.msk.msra.mxu1 %vm31_vm0, %v2366_v48  ;;  %2170 = vmatprep.mubr.msk.f32.mxu1 %vm2402_vm1, %v2403_v23 }
 0x3b4   :  { %2173 = vmatprep.subr.mxu1 %v2403_v23 }
 0x485   :  { %v917_v25 = vpop.f32.mrb[10].mxu1 }
 0x486   :  { %v918_v26 = vadd.f32 %v1945_v24, %v917_v25  ;;  %v2156_v27 = vpop.f32.mrb[11].mxu1 }
 0x488   :  { %2373 = vtanh.f32 %v918_v26 }
 0x489   :  { %2375 = vtanh.f32 %v1004_v32 }
 0x48a   :  { %2377 = vtanh.f32 %v1009_v35 }
 0x48b   :  { %2379 = vtanh.f32 %v2612_v44 }
 0x492   :  { %v2374_v38 = vpop.eup %2373 }
 0x493   :  { %v1014_v39 = vadd.f32 %v2374_v38, %v2372_v36  ;;  %v2376_v45 = vpop.eup %2375  ;;  %v1707_v38 = vld [vmem:[%s2801_s1 + $0x100] sm:$0xff] }
 0x494   :  { %v2378_v50 = vpop.eup %2377 }
 0x495   :  { %v1022_v40 = vrot.slane %v1014_v39, %v1021_v37  ;;  %v2380_v53 = vpop.eup %2379  ;;  %v1708_v39 = vld [vmem:[%s2801_s1 + $0x108] sm:$0xff] }
 0x497   :  { %v1023_v42 = vcombine.high %v1022_v40, %v1022_v40  ;;  %v1030_v43 = vrot.slane %v1022_v40, %v1021_v37  ;;  %v1709_v40 = vld [vmem:[%s2801_s1 + $0x110] sm:$0xff] }
 0x499   :  { %v1037_v46 = vrot.slane %v1023_v42, %v1021_v37  ;;  %v1041_v47 = vrot.slane %v1030_v43, %v1040_v41  ;;  %v1710_v42 = vld [vmem:[%s2801_s1 + $0x118] sm:$0xff] }
 0x49a   :  { %v2316_v43 = vpack.c.bf16 %v1710_v42, %v1709_v40 }
 0x49b   :  { %v1045_v48 = vrot.slane %v1037_v46, %v1040_v41  ;;  %v2674_v49 = vadd.f32 %v2376_v45, %v1041_v47  ;;  %v2312_v41 = vpack.c.bf16 %v1708_v39, %v1707_v38  ;;  %v1711_v45 = vld [vmem:[%s2801_s1 + $0x120] sm:$0xff]  ;;  %v1712_v46 = vld [vmem:[%s2801_s1 + $0x128] sm:$0xff] }
 0x49c   :  { %v2320_v47 = vpack.c.bf16 %v1712_v46, %v1711_v45 }
 0x49d   :  { %v2676_v51 = vadd.f32 %v2378_v50, %v1045_v48  ;;  %v1050_v52 = vmul.f32 0.17677669, %v2674_v49  ;;  %v1713_v48 = vld [vmem:[%s2801_s1 + $0x130] sm:$0xff]  ;;  %v1714_v50 = vld [vmem:[%s2801_s1 + $0x138] sm:$0xff] }
 0x49f   :  { %2171 = vmatmul.mubr.msk.f32.vlgmr.msra.gmra.mrb[12].mxu1 %vm31_vm0, %v1050_v52  ;;  %v1051_v44 = vmul.f32 0.17677669, %v2676_v51 }
 0x4a0   :  { %2174 = vmatpush3.xpose.msk.msra.mxu1 %vm31_vm0, %v2380_v53  ;;  %2175 = vmatprep.mubr.msk.f32.mxu1 %vm2402_vm1, %v2403_v23 }
 0x4a1   :  { %2183 = vmatprep.subr.mxu1 %v2403_v23 }
 0x4a3   :  { %2176 = vmatmul.mubr.msk.f32.vlgmr.msra.gmra.mrb[14].mxu1 %vm31_vm0, %v1051_v44 }
 0x4a4   :  { %2184 = vmatpush3.msra.mxu1 %v2380_v53  ;;  %2185 = vmatprep.mubr.msk.f32.mxu1 %vm2402_vm1, %v2403_v23  ;;  %v1715_v53 = vld [vmem:[%s2801_s1 + $0x140] sm:$0xff] }
 0x4a5   :  { %2193 = vmatprep.subr.mxu1 %v2403_v23 }
 0x572   :  { %v1124_v54 = vpop.f32.mrb[12].mxu1 }
 0x573   :  { %v2172_v55 = vpop.f32.mrb[13].mxu1  ;;  %v1204_v56 = vsel %vm403_vm3, %v1124_v54, -inf }
 0x574   :  { %1205 = vmax.xlane.f32.xlu0 %v1204_v56  ;;  %v1717_v55 = vld [vmem:[%s2801_s1 + $0x150] sm:$0xff]  ;;  %v1718_v56 = vld [vmem:[%s2801_s1 + $0x158] sm:$0xff] }
 0x576   :  { %v1200_v57 = vpop.f32.mrb[14].mxu1 }
 0x577   :  { %v2177_v58 = vpop.f32.mrb[15].mxu1  ;;  %v1207_v59 = vsel %vm403_vm3, %v1200_v57, -inf }
 0x578   :  { %1208 = vmax.xlane.f32.xlu0 %v1207_v59 }
 0x601   :  { %v1206_v60 = vpop.xlane.xlu0 %1205 }
 0x602   :  { %v1210_v61 = vsub.f32 %v1124_v54, %v1206_v60 }
 0x604   :  { %v1212_v62 = vmul.f32 1.442695, %v1210_v61 }
 0x605   :  { %v1209_v63 = vpop.xlane.xlu0 %1208 }
 0x606   :  { %2381 = vpow2.f32 %v1212_v62  ;;  %v1211_v1 = vsub.f32 %v1200_v57, %v1209_v63  ;;  %v2332_v57 = vpack.c.bf16 %v1718_v56, %v1717_v55 }
 0x608   :  { %v1214_v2 = vmul.f32 1.442695, %v1211_v1 }
 0x60a   :  { %2383 = vpow2.f32 %v1214_v2 }
 0x610   :  { %v2382_v3 = vpop.eup %2381 }
 0x611   :  { %v1216_v4 = vsel %vm403_vm3, %v2382_v3, 0.0 }
 0x612   :  { %1217 = vadd.xlane.f32.xlu1 %v1216_v4 }
 0x614   :  { %v2384_v5 = vpop.eup %2383 }
 0x615   :  { %v1219_v6 = vsel %vm403_vm3, %v2384_v5, 0.0 }
 0x616   :  { %1220 = vadd.xlane.f32.xlu1 %v1219_v6 }
 0x69f   :  { %v1218_v7 = vpop.xlane.xlu1 %1217 }
 0x6a0   :  { %2385 = vrcp.f32 %v1218_v7  ;;  %v1808_v7 = vld [vmem:[%s2801_s1 + $0x180] sm:$0xff] }
 0x6a3   :  { %v1221_v8 = vpop.xlane.xlu1 %1220 }
 0x6a4   :  { %2387 = vrcp.f32 %v1221_v8  ;;  %v1810_v8 = vld [vmem:[%s2801_s1 + $0x190] sm:$0xff] }
 0x6aa   :  { %v2386_v9 = vpop.eup %2385 }
 0x6ab   :  { %v1224_v10 = vmul.f32 %v2386_v9, %v2382_v3 }
 0x6ad   :  { %2181 = vmatmul.mubr.msk.f32.vlgmr.msra.gmra.mrb[10].mxu0 %vm403_vm3, %v1224_v10 }
 0x6ae   :  { %v2388_v11 = vpop.eup %2387  ;;  %2189 = vmatpush3.xpose.msk.msra.mxu0 %vm31_vm0, %v2652_v0  ;;  %2190 = vmatprep.mubr.msk.f32.mxu0 %vm2402_vm1, %v2403_v23 }
 0x6af   :  { %v1225_v12 = vmul.f32 %v2388_v11, %v2384_v5  ;;  %2198 = vmatprep.subr.mxu0 %v2403_v23  ;;  %v1962_v11 = vld [vmem:[%s2801_s1 + $0x1e0] ss:$0 sm:$0xff] }
 0x6b1   :  { %2186 = vmatmul.mubr.msk.f32.vlgmr.msra.gmra.mrb[16].mxu1 %vm403_vm3, %v1225_v12  ;;  %2191 = vmatmul.mubr.msk.f32.vlgmr.msra.gmra.mrb[12].mxu0 %vm31_vm0, %v1050_v52  ;;  %v2324_v52 = vpack.c.bf16 %v1714_v50, %v1713_v48 }
 0x6b2   :  { %2194 = vmatpush3.xpose.msk.msra.mxu1 %vm31_vm0, %v2650_v18  ;;  %2199 = vmatpush3.msra.mxu0 %v2652_v0 }
 0x6b3   :  { %2195 = vmatprep.mubr.msk.f32.mxu1 %vm2402_vm1, %v2403_v23  ;;  %2203 = vmatprep.subr.mxu1 %v2403_v23 }
 0x6b4   :  { %2200 = vmatprep.mubr.msk.f32.mxu0 %vm2402_vm1, %v2403_v23  ;;  %2313 = vmatprep.subr.bf16.mxu0 %v2312_v41 }
 0x6b5   :  { %2196 = vmatmul.mubr.msk.f32.vlgmr.msra.gmra.mrb[18].mxu1 %vm31_vm0, %v1051_v44  ;;  %v1716_v44 = vld [vmem:[%s2801_s1 + $0x148] sm:$0xff] }
 0x6b6   :  { %2204 = vmatpush3.msra.mxu1 %v2650_v18  ;;  %2205 = vmatprep.mubr.msk.f32.mxu1 %vm2402_vm1, %v2403_v23  ;;  %v2328_v54 = vpack.c.bf16 %v1716_v44, %v1715_v53 }
 0x780   :  { %v1295_v13 = vpop.f32.mrb[10].mxu0 }
 0x781   :  { %v2182_v14 = vpop.f32.mrb[11].mxu0 }
 0x784   :  { %v2713_v15 = vpop.f32.mrb[16].mxu1  ;;  %v1441_v0 = vpop.f32.mrb[12].mxu0 }
 0x785   :  { %v2187_v16 = vpop.f32.mrb[17].mxu1  ;;  %v2192_v17 = vpop.f32.mrb[13].mxu0  ;;  %v1518_v19 = vsel %vm403_vm3, %v1441_v0, -inf }
 0x786   :  { %1519 = vmax.xlane.f32.xlu0 %v1518_v19  ;;  %v1965_v17 = vld [vmem:[%s2801_s1 + $0x1e8] ss:$0 sm:$0xff] }
 0x788   :  { %v1514_v20 = vpop.f32.mrb[18].mxu1 }
 0x789   :  { %v2197_v21 = vpop.f32.mrb[19].mxu1  ;;  %v1521_v22 = vsel %vm403_vm3, %v1514_v20, -inf }
 0x78a   :  { %1522 = vmax.xlane.f32.xlu1 %v1521_v22 }
 0x813   :  { %v1520_v24 = vpop.xlane.xlu0 %1519 }
 0x814   :  { %v1524_v18 = vsub.f32 %v1441_v0, %v1520_v24 }
 0x816   :  { %v1526_v25 = vmul.f32 1.442695, %v1524_v18 }
 0x817   :  { %v1523_v26 = vpop.xlane.xlu1 %1522 }
 0x818   :  { %2389 = vpow2.f32 %v1526_v25  ;;  %v1525_v23 = vsub.f32 %v1514_v20, %v1523_v26 }
 0x81a   :  { %v1528_v27 = vmul.f32 1.442695, %v1525_v23 }
 0x81c   :  { %2391 = vpow2.f32 %v1528_v27 }
 0x822   :  { %v2390_v28 = vpop.eup %2389 }
 0x823   :  { %v1530_v29 = vsel %vm403_vm3, %v2390_v28, 0.0 }
 0x824   :  { %1531 = vadd.xlane.f32.xlu0 %v1530_v29 }
 0x826   :  { %v2392_v30 = vpop.eup %2391 }
 0x827   :  { %v1533_v31 = vsel %vm403_vm3, %v2392_v30, 0.0 }
 0x828   :  { %1534 = vadd.xlane.f32.xlu1 %v1533_v31 }
 0x839   :  { %1690 = vrot.lane.b32.xlu1 %v2713_v15, %s2405_s17 }
 0x83a   :  { %1688 = vrot.lane.b32.xlu0 %v1295_v13, %s2405_s17 }
 0x83e   :  { %1898 = vrot.lane.b32.xlu0 %v1295_v13, %s2406_s18 }
 0x8b1   :  { %v1532_v32 = vpop.xlane.xlu0 %1531 }
 0x8b2   :  { %2393 = vrcp.f32 %v1532_v32 }
 0x8b5   :  { %v1535_v33 = vpop.xlane.xlu1 %1534  ;;  %v1689_v63 = vpop.permute.xlu0 %1688 }
 0x8b6   :  { %2395 = vrcp.f32 %v1535_v33  ;;  %v1702_v1 = vsel %vm31_vm0, %v2674_v49, %v1689_v63  ;;  %v1809_v49 = vld [vmem:[%s2801_s1 + $0x188] sm:$0xff] }
 0x8b7   :  { %v2336_v9 = vpack.c.bf16 %v1809_v49, %v1808_v7 }
 0x8b9   :  { %v1691_v62 = vpop.permute.xlu1 %1690  ;;  %2337 = vmatprep.subr.bf16.mxu1 %v2336_v9  ;;  %v1899_v20 = vpop.permute.xlu0 %1898 }
 0x8ba   :  { %v1703_v4 = vsel %vm31_vm0, %v2676_v51, %v1691_v62  ;;  %v1811_v51 = vld [vmem:[%s2801_s1 + $0x198] sm:$0xff] }
 0x8bb   :  { %v2340_v10 = vpack.c.bf16 %v1811_v51, %v1810_v8 }
 0x8bc   :  { %v2394_v34 = vpop.eup %2393 }
 0x8bd   :  { %v1538_v35 = vmul.f32 %v2394_v34, %v2390_v28 }
 0x8bf   :  { %2201 = vmatmul.mubr.msk.f32.vlgmr.msra.gmra.mrb[14].mxu0 %vm403_vm3, %v1538_v35 }
 0x8c0   :  { %v2396_v36 = vpop.eup %2395  ;;  %2315 = vmatpush3.bf16.msra.mxu0 %v2312_v41 }
 0x8c1   :  { %v1539_v37 = vmul.f32 %v2396_v36, %v2392_v30  ;;  %2317 = vmatprep.subr.bf16.mxu0 %v2316_v43 }
 0x8c3   :  { %2206 = vmatmul.mubr.msk.f32.vlgmr.msra.gmra.mrb[20].mxu1 %vm403_vm3, %v1539_v37 }
 0x8c4   :  { %2319 = vmatpush3.bf16.msra.mxu0 %v2316_v43  ;;  %2339 = vmatpush3.bf16.msra.mxu1 %v2336_v9 }
 0x8c5   :  { %2321 = vmatprep.subr.bf16.mxu0 %v2320_v47  ;;  %2341 = vmatprep.subr.bf16.mxu1 %v2340_v10 }
 0x8c8   :  { %2323 = vmatpush3.bf16.msra.mxu0 %v2320_v47  ;;  %2343 = vmatpush3.bf16.msra.mxu1 %v2340_v10 }
 0x8c9   :  { %2325 = vmatprep.subr.bf16.mxu0 %v2324_v52 }
 0x8cc   :  { %2327 = vmatpush3.bf16.msra.mxu0 %v2324_v52 }
 0x8cd   :  { %2329 = vmatprep.subr.bf16.mxu0 %v2328_v54 }
 0x8d0   :  { %2331 = vmatpush3.bf16.msra.mxu0 %v2328_v54 }
 0x8d1   :  { %2333 = vmatprep.subr.bf16.mxu0 %v2332_v57 }
 0x8d4   :  { %2335 = vmatpush3.bf16.msra.mxu0 %v2332_v57 }
 0x992   :  { %v1609_v58 = vpop.f32.mrb[14].mxu0 }
 0x993   :  { %v2202_v59 = vpop.f32.mrb[15].mxu0  ;;  %1696 = vrot.lane.b32.xlu1 %v1609_v58, %s2406_s18 }
 0x996   :  { %v1682_v60 = vpop.f32.mrb[20].mxu1 }
 0x997   :  { %1698 = vrot.lane.b32.xlu1 %v1682_v60, %s2406_s18  ;;  %v2207_v61 = vpop.f32.mrb[21].mxu1 }
 0x99b   :  { %1900 = vrot.lane.b32.xlu1 %v2713_v15, %s2406_s18 }
 0xa05   :  { %v1697_v2 = vpop.permute.xlu1 %1696 }
 0xa06   :  { %v1705_v3 = vsel %vm1704_vm4, %v1702_v1, %v1697_v2 }
 0xa07   :  { %2232 = vmatprep.mubr.msk.f32.mxu0 %vm1724_vm5, %v1705_v3 }
 0xa09   :  { %v1699_v5 = vpop.permute.xlu1 %1698 }
 0xa0a   :  { %v1706_v6 = vsel %vm1704_vm4, %v1703_v4, %v1699_v5 }
 0xa0b   :  { %2233 = vmatmul.mubr.msk.f32.vlgmr.msra.gmra.mrb[16].mxu0 %vm1724_vm5, %v1706_v6 }
 0xa0d   :  { %v1901_v19 = vpop.permute.xlu1 %1900 }
 0xade   :  { %v2234_v12 = vpop.f32.mrb[16].mxu0 }
 0xadf   :  { %v1803_v13 = vadd.f32 %v2234_v12, %v1962_v11  ;;  %v1797_v14 = vpop.f32.mrb[17].mxu0 }
 0xae0   :  { %v1798_v15 = vadd.f32 %v1962_v11, %v1797_v14 }
 0xae1   :  { %2397 = vtanh.f32 %v1803_v13 }
 0xae2   :  { %2399 = vtanh.f32 %v1798_v15 }
 0xaeb   :  { %v2398_v0 = vpop.eup %2397 }
 0xaec   :  { %v2400_v16 = vpop.eup %2399  ;;  %1906 = vrot.lane.b32.xlu1 %v2398_v0, %s2407_s24 }
 0xaed   :  { %1904 = vrot.lane.b32.xlu0 %v2400_v16, %s2407_s24  ;;  %2243 = vmatprep.mubr.msk.f32.mxu1 %vm31_vm0, %v2400_v16 }
 0xaee   :  { %2244 = vmatmul.mubr.msk.f32.vlgmr.msra.gmra.mrb[22].mxu1 %vm31_vm0, %v2398_v0 }
 0xb5e   :  { %v1907_v25 = vpop.permute.xlu1 %1906 }
 0xb5f   :  { %v1905_v23 = vpop.permute.xlu0 %1904 }
 0xbc1   :  { %v2245_v21 = vpop.f32.mrb[22].mxu1 }
 0xbc2   :  { %v1895_v22 = vadd.f32 %v2245_v21, %v1965_v17  ;;  %v1889_v24 = vpop.f32.mrb[23].mxu1 }
 0xbc3   :  { %v1890_v18 = vadd.f32 %v1965_v17, %v1889_v24 }
 0xbc4   :  { %v1911_v26 = vsel %vm1704_vm4, %v1895_v22, %v1901_v19 }
 0xbc5   :  { %v1913_v27 = vsel %vm1724_vm5, %v1911_v26, %v1907_v25  ;;  %v1910_v28 = vsel %vm1704_vm4, %v1890_v18, %v1899_v20 }
 0xbc6   :  { %1915 = vst [vmem:[%s2805_s4 + $0x8] sm:$0xff] %v1913_v27  ;;  %v1912_v29 = vsel %vm1724_vm5, %v1910_v28, %v1905_v23 }
 0xbc7   :  { %1914 = vst [vmem:[%s2805_s4] sm:$0xff] %v1912_v29 }

</bundles_post_ra>
